<compile_context>
chip_gen: v7x
topology: tpu7x:2x2x1
jax: 0.10.0
libtpu: 0.0.40
codegen_flags: <defaults>
</compile_context>

<pallas_src>
import functools
import math

import jax
import jax.numpy as jnp
from jax import lax
from jax.experimental import pallas as pl
from jax.experimental.pallas import tpu as pltpu

_LANE = 128
_TARGET_BLOCK_BYTES = 4 * 1024 * 1024   # per-input-block target, streamed passes


def _round_up(x, m):
    return -(-x // m) * m


def _vmem_capacity_bytes():
    try:
        v = getattr(pltpu.get_tpu_info(), "vmem_capacity_bytes", None)
        if v:
            return int(v)
    except Exception:
        pass
    return 64 * 1024 * 1024              # conservative default (v7x per-TC VMEM)


def _num_tensorcores():
    """Best-effort TensorCores-per-chip query (stats megacore split)."""
    try:
        info = pltpu.get_tpu_info()
        for name in ("num_cores", "core_count", "num_tensorcores"):
            v = getattr(info, name, None)
            if isinstance(v, int) and 1 <= v <= 8:
                return v
    except Exception:
        pass
    try:
        kind = (jax.devices()[0].device_kind or "").lower()
        if ("v4" in kind) or ("v5p" in kind) or ("v7" in kind):
            return 2
    except Exception:
        pass
    return 1


# --------------------------------------------------------------------------
# Kernels
# --------------------------------------------------------------------------
def _fused_bn_kernel(x_ref, w_ref, b_ref, o_ref, *, eps):
    """Whole-array batchnorm: stats + normalize in one VMEM-resident pass."""
    x = x_ref[...].astype(jnp.float32)
    inv_n = 1.0 / float(x.shape[0])
    mean = jnp.sum(x, axis=0, keepdims=True) * inv_n
    msq = jnp.sum(x * x, axis=0, keepdims=True) * inv_n
    # TODO(synk): E[x^2]-E[x]^2 is cancellation-prone when |mean| >> std; the
    # clamp avoids NaN but a Welford/shifted merge would be more robust.
    var = jnp.maximum(msq - mean * mean, 0.0)
    scale = w_ref[...] * lax.rsqrt(var + eps)
    shift = b_ref[...] - mean * scale
    o_ref[...] = (x * scale + shift).astype(o_ref.dtype)


def _stats_kernel(x_ref, sum_ref, sq_ref, *, dim, groups, tile_rows, n_half,
                  rows_total, ragged):
    """Per-feature partial sum / sum-of-squares; resident accumulator per split."""
    c = pl.program_id(0)
    j = pl.program_id(1)

    @pl.when(j == 0)
    def _():
        sum_ref[...] = jnp.zeros_like(sum_ref)
        sq_ref[...] = jnp.zeros_like(sq_ref)

    x = x_ref[...].astype(jnp.float32)
    if ragged:
        # Zero rows past the true (folded) row count: handles the partial last
        # tile and any fully-out-of-range tiles whose index_map was clamped.
        row0 = (c * n_half + j) * tile_rows
        rows = row0 + lax.broadcasted_iota(jnp.int32, (x.shape[0], 1), 0)
        x = jnp.where(rows < rows_total, x, 0.0)

    s = jnp.sum(x, axis=0, keepdims=True)        # (1, groups*dim)
    q = jnp.sum(x * x, axis=0, keepdims=True)
    if groups > 1:                               # fold lane groups -> (1, dim)
        s = functools.reduce(
            lambda a, b: a + b,
            [s[:, gi * dim:(gi + 1) * dim] for gi in range(groups)])
        q = functools.reduce(
            lambda a, b: a + b,
            [q[:, gi * dim:(gi + 1) * dim] for gi in range(groups)])
    sum_ref[...] += s
    sq_ref[...] += q


def _norm_kernel(x_ref, sum_ref, sq_ref, w_ref, b_ref, o_ref, *,
                 eps, n_rows, dim, groups, splits):
    """Streaming normalize; scale/shift derived in-kernel from partial sums."""
    tot = sum_ref[0]                              # (1, dim)
    totq = sq_ref[0]
    for s in range(1, splits):
        tot = tot + sum_ref[s]
        totq = totq + sq_ref[s]
    inv_n = 1.0 / float(n_rows)
    mean = tot * inv_n
    var = jnp.maximum(totq * inv_n - mean * mean, 0.0)   # biased, clamped
    scale = w_ref[...] * lax.rsqrt(var + eps)
    shift = b_ref[...] - mean * scale
    if groups > 1:                                # (1, dim) -> (1, groups*dim)
        scale = jnp.concatenate([scale] * groups, axis=-1)
        shift = jnp.concatenate([shift] * groups, axis=-1)
    x = x_ref[...].astype(jnp.float32)
    o_ref[...] = (x * scale + shift).astype(o_ref.dtype)


# --------------------------------------------------------------------------
# Wrapper
# --------------------------------------------------------------------------
def batchnorm1d_edge(edge_attr, weight, bias, *, eps=1e-5,
                     force_two_pass=False, tile_rows=None):
    """Training-mode BatchNorm1d over edge_attr [E, D]; weight/bias: [D]."""
    E, D = edge_attr.shape
    out_dtype = edge_attr.dtype
    itemsize = jnp.dtype(edge_attr.dtype).itemsize

    vmem = _vmem_capacity_bytes()
    vmem_limit = min(int(vmem * 0.85), vmem - (2 << 20))
    fast_bytes = vmem // 8           # double-buffered in/out + f32 temps fit

    w2 = weight.reshape(1, D).astype(jnp.float32)
    b2 = bias.reshape(1, D).astype(jnp.float32)

    # Lane-dense fold [E, D] -> [E/g, g*D] whenever D is not 128-aligned and
    # the refold is free (E % g == 0 -> pure row-major bitcast, no padding).
    g = 1
    if D % _LANE != 0:
        g_full = math.lcm(D, _LANE) // D
        if E % g_full == 0:
            g = g_full
    Df = g * D
    Ef = E // g

    # dtype-aware sublane granularity: f32 -> 8, bf16 -> 16, int8/fp8 -> 32
    sub = 8 * max(1, 4 // itemsize)

    # ---------------- fused fast path: one HBM read + one write --------------
    if (not force_two_pass and E * D * itemsize <= fast_bytes) or Ef < sub:
        return pl.pallas_call(
            functools.partial(_fused_bn_kernel, eps=eps),
            out_shape=jax.ShapeDtypeStruct((E, D), out_dtype),
            grid=(1,),
            in_specs=[
                pl.BlockSpec((E, D), lambda i: (0, 0)),
                pl.BlockSpec((1, D), lambda i: (0, 0)),
                pl.BlockSpec((1, D), lambda i: (0, 0)),
            ],
            out_specs=pl.BlockSpec((E, D), lambda i: (0, 0)),
            compiler_params=pltpu.CompilerParams(
                dimension_semantics=("arbitrary",),
                vmem_limit_bytes=vmem_limit),
        )(edge_attr, w2, b2)

    # ---------------- tiled two-pass path (no padding, no output slice) ------
    x_f = edge_attr.reshape(Ef, Df) if g > 1 else edge_attr   # free refold

    splits = _num_tensorcores()        # 2-TC split on v4/v5p/v7x, 1 on v5e/v6e
    half = -(-Ef // splits)
    if tile_rows is None:
        tile_rows = max(1, _TARGET_BLOCK_BYTES // (Df * itemsize))
    tile_rows = _round_up(max(int(tile_rows), 1), sub)
    tile_rows = min(tile_rows, max(sub, half // sub * sub))   # never > Ef rows

    n_half = -(-half // tile_rows)             # row tiles per split
    n_tiles = -(-Ef // tile_rows)              # true number of row tiles
    ragged = (n_tiles * tile_rows != Ef) or (splits * n_half != n_tiles)

    if splits * n_half == n_tiles:
        stats_x_map = lambda c, j: (c * n_half + j, 0)
    else:
        # Clamp fully-out-of-range tiles onto the last real tile; their rows
        # are zeroed by the in-kernel mask, so they contribute nothing.
        stats_x_map = lambda c, j: (jnp.minimum(c * n_half + j, n_tiles - 1), 0)

    # -- pass 1: per-feature partial sums (resident f32 accumulators) ---------
    sums, sqs = pl.pallas_call(
        functools.partial(_stats_kernel, dim=D, groups=g, tile_rows=tile_rows,
                          n_half=n_half, rows_total=Ef, ragged=ragged),
        out_shape=(jax.ShapeDtypeStruct((splits, 1, D), jnp.float32),
                   jax.ShapeDtypeStruct((splits, 1, D), jnp.float32)),
        grid=(splits, n_half),
        in_specs=[pl.BlockSpec((tile_rows, Df), stats_x_map)],
        out_specs=(pl.BlockSpec((None, 1, D), lambda c, j: (c, 0, 0)),
                   pl.BlockSpec((None, 1, D), lambda c, j: (c, 0, 0))),
        compiler_params=pltpu.CompilerParams(
            dimension_semantics=("parallel", "arbitrary"),
            vmem_limit_bytes=vmem_limit),
    )(x_f)

    # -- pass 2: streaming normalize; mean/var/scale/shift folded in-kernel ---
    out_f = pl.pallas_call(
        functools.partial(_norm_kernel, eps=eps, n_rows=E, dim=D, groups=g,
                          splits=splits),
        out_shape=jax.ShapeDtypeStruct((Ef, Df), out_dtype),
        grid=(n_tiles,),
        in_specs=[
            pl.BlockSpec((tile_rows, Df), lambda i: (i, 0)),
            pl.BlockSpec((splits, 1, D), lambda i: (0, 0, 0)),
            pl.BlockSpec((splits, 1, D), lambda i: (0, 0, 0)),
            pl.BlockSpec((1, D), lambda i: (0, 0)),
            pl.BlockSpec((1, D), lambda i: (0, 0)),
        ],
        out_specs=pl.BlockSpec((tile_rows, Df), lambda i: (i, 0)),
        compiler_params=pltpu.CompilerParams(
            dimension_semantics=("parallel",),
            vmem_limit_bytes=vmem_limit),
    )(x_f, sums, sqs, w2, b2)

    return out_f.reshape(E, D) if g > 1 else out_f


# --------------------------------------------------------------------------
# Self-test
# --------------------------------------------------------------------------
if __name__ == "__main__":
    dim_in = 32          # LayerConfig.dim_in
    eps = 1e-5           # LayerConfig.bn_eps

    def reference(x, w, b):
        m = jnp.mean(x, axis=0, keepdims=True)
        v = jnp.mean((x - m) ** 2, axis=0, keepdims=True)   # biased (training)
        return (x - m) / jnp.sqrt(v + eps) * w + b

    # nn.BatchNorm1d default parameter init: weight = 1, bias = 0
    weight = jnp.ones((dim_in,), dtype=jnp.float32)
    bias = jnp.zeros((dim_in,), dtype=jnp.float32)

    # 1) small edge set -> fused single-kernel fast path
    key = jax.random.PRNGKey(0)
    edge_attr = jax.random.normal(key, (64, dim_in), dtype=jnp.float32)
    y = jax.block_until_ready(batchnorm1d_edge(edge_attr, weight, bias, eps=eps))
    assert jnp.allclose(y, reference(edge_attr, weight, bias),
                        atol=1e-5, rtol=1e-5), "fast path mismatch"

    # 2) tiled two-pass path: lane-dense fold (E % g == 0), multi-tile stats
    k2, k3, k4 = jax.random.split(jax.random.PRNGKey(1), 3)
    edge_attr2 = 3.0 + 2.0 * jax.random.normal(k2, (1000, dim_in), jnp.float32)
    weight2 = jax.random.normal(k3, (dim_in,), jnp.float32)
    bias2 = jax.random.normal(k4, (dim_in,), jnp.float32)
    y2 = jax.block_until_ready(
        batchnorm1d_edge(edge_attr2, weight2, bias2, eps=eps,
                         force_two_pass=True, tile_rows=16))
    assert jnp.allclose(y2, reference(edge_attr2, weight2, bias2),
                        atol=1e-3, rtol=1e-3), "tiled (folded) path mismatch"

    # 3) tiled path with ragged, non-foldable E (masked last tile, no padding)
    edge_attr3 = jax.random.normal(jax.random.PRNGKey(2), (1001, dim_in),
                                   jnp.float32)
    y3 = jax.block_until_ready(
        batchnorm1d_edge(edge_attr3, weight2, bias2, eps=eps,
                         force_two_pass=True))
    assert jnp.allclose(y3, reference(edge_attr3, weight2, bias2),
                        atol=1e-3, rtol=1e-3), "tiled (ragged) path mismatch"

    print("KERNEL_OK")
</pallas_src>

<mosaic_0001>
module attributes {stable_mosaic.version = 11 : i64} {
  func.func @_fused_bn_kernel(%arg0: i32, %arg1: memref<64x32xf32, #tpu.memory_space<vmem>>, %arg2: memref<1x32xf32, #tpu.memory_space<vmem>>, %arg3: memref<1x32xf32, #tpu.memory_space<vmem>>, %arg4: memref<64x32xf32, #tpu.memory_space<vmem>>) attributes {dimension_semantics = [#tpu.dimension_semantics<arbitrary>], iteration_bounds = array<i64: 1>, scalar_prefetch = 0 : i64, scratch_operands = 0 : i64, tpu.core_type = #tpu.core_type<tc>, window_params = [{pipeline_mode = #tpu.pipeline_mode<synchronous>, transform_indices = @transform_0, window_bounds = array<i64: 64, 32>}, {pipeline_mode = #tpu.pipeline_mode<synchronous>, transform_indices = @transform_1, window_bounds = array<i64: 1, 32>}, {pipeline_mode = #tpu.pipeline_mode<synchronous>, transform_indices = @transform_2, window_bounds = array<i64: 1, 32>}, {pipeline_mode = #tpu.pipeline_mode<synchronous>, transform_indices = @transform_3, window_bounds = array<i64: 64, 32>}]} {
    %c0 = arith.constant 0 : index
    %c0_0 = arith.constant 0 : index
    %0 = vector.load %arg1[%c0, %c0_0] : memref<64x32xf32, #tpu.memory_space<vmem>>, vector<64x32xf32>
    %cst = arith.constant dense<0.000000e+00> : vector<32xf32>
    %1 = vector.multi_reduction <add>, %0, %cst [0] : vector<64x32xf32> to vector<32xf32>
    %2 = vector.shape_cast %1 : vector<32xf32> to vector<1x32xf32>
    %cst_1 = arith.constant 1.562500e-02 : f32
    %3 = vector.broadcast %cst_1 : f32 to vector<1x32xf32>
    %4 = arith.mulf %2, %3 : vector<1x32xf32>
    %5 = arith.mulf %0, %0 : vector<64x32xf32>
    %cst_2 = arith.constant dense<0.000000e+00> : vector<32xf32>
    %6 = vector.multi_reduction <add>, %5, %cst_2 [0] : vector<64x32xf32> to vector<32xf32>
    %7 = vector.shape_cast %6 : vector<32xf32> to vector<1x32xf32>
    %cst_3 = arith.constant 1.562500e-02 : f32
    %8 = vector.broadcast %cst_3 : f32 to vector<1x32xf32>
    %9 = arith.mulf %7, %8 : vector<1x32xf32>
    %10 = arith.mulf %4, %4 : vector<1x32xf32>
    %11 = arith.subf %9, %10 : vector<1x32xf32>
    %cst_4 = arith.constant 0.000000e+00 : f32
    %12 = vector.broadcast %cst_4 : f32 to vector<1x32xf32>
    %13 = arith.maximumf %11, %12 : vector<1x32xf32>
    %c0_5 = arith.constant 0 : index
    %c0_6 = arith.constant 0 : index
    %14 = vector.load %arg2[%c0_5, %c0_6] : memref<1x32xf32, #tpu.memory_space<vmem>>, vector<1x32xf32>
    %cst_7 = arith.constant 9.99999974E-6 : f32
    %15 = vector.broadcast %cst_7 : f32 to vector<1x32xf32>
    %16 = arith.addf %13, %15 : vector<1x32xf32>
    %17 = math.rsqrt %16 : vector<1x32xf32>
    %18 = arith.mulf %14, %17 : vector<1x32xf32>
    %c0_8 = arith.constant 0 : index
    %c0_9 = arith.constant 0 : index
    %19 = vector.load %arg3[%c0_8, %c0_9] : memref<1x32xf32, #tpu.memory_space<vmem>>, vector<1x32xf32>
    %20 = arith.mulf %4, %18 : vector<1x32xf32>
    %21 = arith.subf %19, %20 : vector<1x32xf32>
    %22 = vector.broadcast %18 : vector<1x32xf32> to vector<64x32xf32>
    %23 = arith.mulf %0, %22 : vector<64x32xf32>
    %24 = vector.broadcast %21 : vector<1x32xf32> to vector<64x32xf32>
    %25 = arith.addf %23, %24 : vector<64x32xf32>
    %c0_10 = arith.constant 0 : index
    %c0_11 = arith.constant 0 : index
    %26 = vector.load %arg4[%c0_10, %c0_11] : memref<64x32xf32, #tpu.memory_space<vmem>>, vector<64x32xf32>
    tpu.vector_store %arg4[%c0_10, %c0_11], %25 {strides = array<i32>} : memref<64x32xf32, #tpu.memory_space<vmem>>, vector<64x32xf32>,
    return
  }
  func.func @transform_0(%arg0: i32) -> (i32, i32) {
    %c0_i32 = arith.constant 0 : i32
    %c0_i32_0 = arith.constant 0 : i32
    %c0_i32_1 = arith.constant 0 : i32
    return %c0_i32, %c0_i32_0 : i32, i32
  }
  func.func @transform_1(%arg0: i32) -> (i32, i32) {
    %c0_i32 = arith.constant 0 : i32
    %c0_i32_0 = arith.constant 0 : i32
    %c0_i32_1 = arith.constant 0 : i32
    return %c0_i32, %c0_i32_0 : i32, i32
  }
  func.func @transform_2(%arg0: i32) -> (i32, i32) {
    %c0_i32 = arith.constant 0 : i32
    %c0_i32_0 = arith.constant 0 : i32
    %c0_i32_1 = arith.constant 0 : i32
    return %c0_i32, %c0_i32_0 : i32, i32
  }
  func.func @transform_3(%arg0: i32) -> (i32, i32) {
    %c0_i32 = arith.constant 0 : i32
    %c0_i32_0 = arith.constant 0 : i32
    %c0_i32_1 = arith.constant 0 : i32
    return %c0_i32, %c0_i32_0 : i32, i32
  }
}

</mosaic_0001>

<bundles_post_ra>
// kernel: tpu_custom_call.1
= control target key start
LH: loop header
LB: loop body
LE: loop exit
PB: predicated region body
PF: predicated region fallthrough
CT: control target
= control target key end

     0   :  { %vm22_vm0 = vcmask 261120   ;;  %s267_s0 = inlined_call_operand.vmem [shape: f32[64,32], index: 0, kind: input, shape index: {}]   ;;  %s268_s1 = inlined_call_operand.vmem [shape: f32[1,32], index: 1, kind: input, shape index: {}]   ;;  %s269_s2 = inlined_call_operand.vmem [shape: f32[1,32], index: 2, kind: input, shape index: {}]   ;;  %s270_s3 = inlined_call_operand.vmem [shape: f32[64,32], index: 3, kind: output, shape index: {}]  }
   0x1   :  { %v150_v0 = vld [vmem:[%s267_s0] sm:$0xff]  ;;  %v155_v1 = vld [vmem:[%s267_s0 + $0x8] sm:$0xff]  ;;  %v160_v2 = vld [vmem:[%s267_s0 + $0x10] sm:$0xff] }
   0x2   :  { %v165_v3 = vld [vmem:[%s267_s0 + $0x18] sm:$0xff]  ;;  %v23_v4 = vsel %vm22_vm0, %v150_v0, 0.0  ;;  %v24_v5 = vsel %vm22_vm0, %v155_v1, 0.0  ;;  %v26_v6 = vsel %vm22_vm0, %v160_v2, 0.0  ;;  %v45_v7 = vmul.f32 %v150_v0, %v150_v0  ;;  %v178_v8 = vld [vmem:[%s267_s0 + $0x20] sm:$0xff]  ;;  %v189_v13 = vld [vmem:[%s267_s0 + $0x28] sm:$0xff] }
   0x3   :  { %v25_v9 = vadd.f32 %v24_v5, %v23_v4  ;;  %v28_v10 = vsel %vm22_vm0, %v165_v3, 0.0  ;;  %v46_v11 = vmul.f32 %v155_v1, %v155_v1  ;;  %v47_v12 = vmul.f32 %v160_v2, %v160_v2  ;;  %v202_v20 = vld [vmem:[%s267_s0 + $0x30] sm:$0xff]  ;;  %v21_v27 = vld [vmem:[%s267_s0 + $0x38] sm:$0xff] }
   0x4   :  { %v48_v15 = vmul.f32 %v165_v3, %v165_v3  ;;  %v30_v16 = vsel %vm22_vm0, %v178_v8, 0.0  ;;  %v49_v17 = vmul.f32 %v178_v8, %v178_v8  ;;  %v53_v18 = vsel %vm22_vm0, %v45_v7, 0.0 }
   0x5   :  { %v27_v14 = vadd.f32 %v26_v6, %v25_v9  ;;  %v54_v19 = vsel %vm22_vm0, %v46_v11, 0.0  ;;  %v56_v23 = vsel %vm22_vm0, %v47_v12, 0.0  ;;  %v32_v24 = vsel %vm22_vm0, %v189_v13, 0.0  ;;  %v78_v6 = vld [vmem:[%s268_s1] sm:$0x1] }
   0x6   :  { %v55_v22 = vadd.f32 %v54_v19, %v53_v18  ;;  %v50_v25 = vmul.f32 %v189_v13, %v189_v13  ;;  %v58_v26 = vsel %vm22_vm0, %v48_v15, 0.0  ;;  %v34_v30 = vsel %vm22_vm0, %v202_v20, 0.0  ;;  %v82_v11 = vld [vmem:[%s269_s2] sm:$0x1] }
   0x7   :  { %v29_v21 = vadd.f32 %v28_v10, %v27_v14  ;;  %v51_v31 = vmul.f32 %v202_v20, %v202_v20  ;;  %v60_v32 = vsel %vm22_vm0, %v49_v17, 0.0  ;;  %v36_v35 = vsel %vm22_vm0, %v21_v27, 0.0 }
   0x8   :  { %v57_v29 = vadd.f32 %v56_v23, %v55_v22  ;;  %v52_v36 = vmul.f32 %v21_v27, %v21_v27  ;;  %v62_v37 = vsel %vm22_vm0, %v50_v25, 0.0  ;;  %v86_v4 = vlaneseq }
   0x9   :  { %v31_v28 = vadd.f32 %v30_v16, %v29_v21  ;;  %v64_v40 = vsel %vm22_vm0, %v51_v31, 0.0 }
   0xa   :  { %v59_v34 = vadd.f32 %v58_v26, %v57_v29  ;;  %v66_v43 = vsel %vm22_vm0, %v52_v36, 0.0  ;;  %v87_v5 = vshrl.u32 %v86_v4, 7 }
   0xb   :  { %v33_v33 = vadd.f32 %v32_v24, %v31_v28 }
   0xc   :  { %v61_v39 = vadd.f32 %v60_v32, %v59_v34  ;;  %v88_v7 = vsub.s32 0, %v87_v5 }
   0xd   :  { %v35_v38 = vadd.f32 %v34_v30, %v33_v33 }
   0xe   :  { %v63_v42 = vadd.f32 %v62_v37, %v61_v39 }
   0xf   :  { %v37_v41 = vadd.f32 %v36_v35, %v35_v38 }
  0x10   :  { %v65_v45 = vadd.f32 %v64_v40, %v63_v42 }
  0x11   :  { %v38_v44 = vrot.slane %v37_v41, 4 }
  0x12   :  { %v67_v47 = vadd.f32 %v66_v43, %v65_v45 }
  0x13   :  { %v39_v46 = vadd.f32 %v38_v44, %v37_v41 }
  0x14   :  { %v68_v49 = vrot.slane %v67_v47, 4 }
  0x15   :  { %v40_v48 = vrot.slane %v39_v46, 2 }
  0x16   :  { %v69_v51 = vadd.f32 %v68_v49, %v67_v47 }
  0x17   :  { %v41_v50 = vadd.f32 %v40_v48, %v39_v46 }
  0x18   :  { %v70_v53 = vrot.slane %v69_v51, 2 }
  0x19   :  { %v42_v52 = vrot.slane %v41_v50, 1 }
  0x1a   :  { %v71_v55 = vadd.f32 %v70_v53, %v69_v51 }
  0x1b   :  { %v43_v54 = vadd.f32 %v42_v52, %v41_v50 }
  0x1c   :  { %v72_v57 = vrot.slane %v71_v55, 1 }
  0x1d   :  { %v44_v56 = vmul.f32 0.015625, %v43_v54 }
  0x1e   :  { %v73_v58 = vadd.f32 %v72_v57, %v71_v55 }
  0x1f   :  { %v75_v59 = vmul.f32 %v44_v56, %v44_v56 }
  0x20   :  { %v74_v60 = vmul.f32 0.015625, %v73_v58 }
  0x22   :  { %v76_v61 = vsub.f32 %v74_v60, %v75_v59 }
  0x24   :  { %v77_v62 = vmax.f32 %v76_v61, 0.0 }
  0x26   :  { %v79_v63 = vadd.f32 1e-05, %v77_v62 }
  0x28   :  { %125 = vrsqrt.f32 %v79_v63 }
  0x32   :  { %v126_v9 = vpop.eup %125 }
  0x33   :  { %v81_v10 = vmul.f32 %v126_v9, %v78_v6 }
  0x35   :  { %v83_v12 = vmul.f32 %v81_v10, %v44_v56  ;;  %v89_v14 = vrot.slane %v81_v10, %v88_v7 }
  0x37   :  { %v84_v15 = vsub.f32 %v82_v11, %v83_v12  ;;  %v91_v16 = vmul.f32 %v89_v14, %v150_v0  ;;  %v92_v17 = vmul.f32 %v89_v14, %v155_v1  ;;  %v93_v18 = vmul.f32 %v89_v14, %v160_v2 }
  0x38   :  { %v94_v19 = vmul.f32 %v89_v14, %v165_v3  ;;  %v95_v21 = vmul.f32 %v89_v14, %v178_v8  ;;  %v96_v22 = vmul.f32 %v89_v14, %v189_v13  ;;  %v97_v23 = vmul.f32 %v89_v14, %v202_v20 }
  0x39   :  { %v103_v24 = vrot.slane %v84_v15, %v88_v7  ;;  %v98_v25 = vmul.f32 %v89_v14, %v21_v27 }
  0x3b   :  { %v105_v26 = vadd.f32 %v103_v24, %v91_v16  ;;  %v106_v28 = vadd.f32 %v103_v24, %v92_v17  ;;  %v107_v29 = vadd.f32 %v103_v24, %v93_v18  ;;  %v108_v30 = vadd.f32 %v103_v24, %v94_v19 }
  0x3c   :  { %v109_v31 = vadd.f32 %v103_v24, %v95_v21  ;;  %v110_v0 = vadd.f32 %v103_v24, %v96_v22  ;;  %v111_v32 = vadd.f32 %v103_v24, %v97_v23  ;;  %v112_v1 = vadd.f32 %v103_v24, %v98_v25 }
  0x3d   :  { %113 = vst.msk [vmem:[%s270_s3] sm:$0xff] %vm22_vm0, %v105_v26  ;;  %114 = vst.msk [vmem:[%s270_s3 + $0x8] sm:$0xff] %vm22_vm0, %v106_v28 }
  0x3e   :  { %115 = vst.msk [vmem:[%s270_s3 + $0x10] sm:$0xff] %vm22_vm0, %v107_v29  ;;  %116 = vst.msk [vmem:[%s270_s3 + $0x18] sm:$0xff] %vm22_vm0, %v108_v30 }
  0x3f   :  { %117 = vst.msk [vmem:[%s270_s3 + $0x20] sm:$0xff] %vm22_vm0, %v109_v31  ;;  %118 = vst.msk [vmem:[%s270_s3 + $0x28] sm:$0xff] %vm22_vm0, %v110_v0 }
  0x40   :  { %119 = vst.msk [vmem:[%s270_s3 + $0x30] sm:$0xff] %vm22_vm0, %v111_v32  ;;  %120 = vst.msk [vmem:[%s270_s3 + $0x38] sm:$0xff] %vm22_vm0, %v112_v1 }

</bundles_post_ra>
